<compile_context>
chip_gen: v7x
topology: tpu7x:2x2x1
jax: 0.10.0
libtpu: 0.0.40
codegen_flags: <defaults>
</compile_context>

<pallas_src>
import functools

import jax
import jax.numpy as jnp
from jax.experimental import pallas as pl
from jax.experimental.pallas import tpu as pltpu


# ------------------------------------------------------------------ kernels -

def gn_stats_kernel(x_ref, gamma_ref, beta_ref, m_ref, mt_ref,
                    scale_ref, shift_ref, *, eps):
    """Per-batch GroupNorm statistics -> per-channel affine scale / shift."""
    x = x_ref[0]                                         # (C, HW) f32
    c, hw = x.shape
    g = m_ref.shape[1]
    n = jnp.float32(hw * (c // g))                       # elems per (batch, group)

    ch_sum = jnp.sum(x, axis=1, keepdims=True)           # (C, 1)
    mean_g = jnp.dot(mt_ref[...], ch_sum,
                     preferred_element_type=jnp.float32) / n          # (G, 1)
    mean_c = jnp.dot(m_ref[...], mean_g,
                     preferred_element_type=jnp.float32)              # (C, 1)
    xc = x - mean_c                                      # centered second pass
    var_sum = jnp.sum(xc * xc, axis=1, keepdims=True)    # (C, 1)
    var_g = jnp.dot(mt_ref[...], var_sum,
                    preferred_element_type=jnp.float32) / n           # (G, 1)
    var_c = jnp.dot(m_ref[...], var_g,
                    preferred_element_type=jnp.float32)               # (C, 1)

    inv = jax.lax.rsqrt(var_c + eps)
    scale = gamma_ref[...] * inv                         # (C, 1)
    scale_ref[0] = scale
    shift_ref[0] = beta_ref[...] - mean_c * scale


def qkv_kernel(x_ref, scale_ref, shift_ref, w_ref, b_ref,
               q_ref, k_ref, v_ref):
    """Normalize one HW tile and apply the fused (3C, C) QKV 1x1 conv."""
    h = x_ref[0] * scale_ref[0] + shift_ref[0]                       # (C, T) f32
    qkv = jax.lax.dot_general(
        w_ref[...], h.astype(jnp.bfloat16),
        (((1,), (0,)), ((), ())),
        preferred_element_type=jnp.float32) + b_ref[...]             # (3C, T) f32
    c = k_ref.shape[1]
    # q stored position-major (T, C): the score matmul in the attention kernel
    # becomes a native (TQ, C) x (C, TK) contraction (no k/q transpose there).
    q_ref[0] = jnp.transpose(qkv[:c]).astype(jnp.bfloat16)           # (T, C)
    k_ref[0] = qkv[c:2 * c].astype(jnp.bfloat16)                     # (C, T)
    v_ref[0] = qkv[2 * c:].astype(jnp.bfloat16)                      # (C, T)


def flash_attn_kernel(x_ref, q_ref, k_ref, v_ref, wp_ref, bp_ref, o_ref,
                      m_ref, l_ref, acc_ref, *, sm_scale):
    """Online-softmax attention over KV tiles + fused proj_out + residual."""
    kv = pl.program_id(2)

    @pl.when(kv == 0)
    def _init():
        m_ref[...] = jnp.full(m_ref.shape, -jnp.inf, jnp.float32)
        l_ref[...] = jnp.zeros(l_ref.shape, jnp.float32)
        acc_ref[...] = jnp.zeros(acc_ref.shape, jnp.float32)

    q = q_ref[0]                                         # (TQ, C) bf16
    k = k_ref[0]                                         # (C, TK) bf16
    v = v_ref[0]                                         # (C, TK) bf16

    # scores s[i, j] = sum_c q[i, c] * k[c, j]  (native MXU contraction)
    s = jax.lax.dot_general(q, k, (((1,), (0,)), ((), ())),
                            preferred_element_type=jnp.float32) * sm_scale

    m_prev = m_ref[...]                                              # (TQ, 1)
    m_new = jnp.maximum(m_prev, jnp.max(s, axis=-1, keepdims=True))
    alpha = jnp.exp(m_prev - m_new)                                  # (TQ, 1)
    p = jnp.exp(s - m_new)                                           # (TQ, TK)
    l_ref[...] = alpha * l_ref[...] + jnp.sum(p, axis=-1, keepdims=True)
    # acc[i, c] += sum_j p[i, j] * v[c, j]   (rhs-transposed contraction)
    acc_ref[...] = alpha * acc_ref[...] + jax.lax.dot_general(
        p.astype(jnp.bfloat16), v, (((1,), (1,)), ((), ())),
        preferred_element_type=jnp.float32)                          # (TQ, C)
    m_ref[...] = m_new

    @pl.when(kv == pl.num_programs(2) - 1)
    def _finalize():
        attn = acc_ref[...] * pl.reciprocal(l_ref[...], approx=True)  # (TQ, C)
        # proj[o, i] = sum_c Wp[o, c] * attn[i, c]  (rhs-transposed contraction)
        proj = jax.lax.dot_general(
            wp_ref[...], attn.astype(jnp.bfloat16),
            (((1,), (1,)), ((), ())),
            preferred_element_type=jnp.float32) + bp_ref[...]         # (C, TQ)
        o_ref[0] = x_ref[0] + proj


# ------------------------------------------------------------------ wrapper -

def _tile(hw, requested):
    if requested is not None:
        assert hw % requested == 0
        return requested
    for cand in (512, 256, 128):
        if hw % cand == 0:
            return cand
    return hw   # small / odd spatial extents: single full-width tile
    # TODO(synk): HW not a multiple of 128 falls back to one full-width tile;
    # ragged tails would need masked loads/stores.


def attn_block(x_nchw, params, *, num_groups=32, eps=1e-6,
               tq=None, tk=None, thw=None):
    """x_nchw: (B, C, H, W) float32. Returns (B, C, H, W)."""
    b, c, h, w = x_nchw.shape
    hw = h * w
    g = num_groups
    assert c % g == 0
    tq, tk, thw = _tile(hw, tq), _tile(hw, tk), _tile(hw, thw)

    x = x_nchw.reshape(b, c, hw)          # NCHW kept; reshape only merges H, W

    gamma = params["gamma"].reshape(c, 1).astype(jnp.float32)
    beta = params["beta"].reshape(c, 1).astype(jnp.float32)
    ch_group = jnp.arange(c, dtype=jnp.int32) // (c // g)
    m = jax.nn.one_hot(ch_group, g, dtype=jnp.float32)               # (C, G)
    mt = m.T                                                         # (G, C)

    # Fused QKV projection: conv weights are (C_out, C_in, 1, 1).
    wqkv = jnp.concatenate(
        [params["wq"].reshape(c, c), params["wk"].reshape(c, c),
         params["wv"].reshape(c, c)], axis=0).astype(jnp.bfloat16)   # (3C, C)
    bqkv = jnp.concatenate(
        [params["bq"], params["bk"], params["bv"]]).reshape(3 * c, 1)
    wp = params["wp"].reshape(c, c).astype(jnp.bfloat16)             # (C, C)
    bp = params["bp"].reshape(c, 1)

    f32, bf16 = 4, 2

    def cparams(sem, ws_bytes):
        # Double-buffered pipeline + headroom; capped at 64 MiB so the limit
        # also fits v7x physical VMEM.
        limit = int(min(max(3 * ws_bytes, 16 << 20), 64 << 20))
        return pltpu.CompilerParams(dimension_semantics=sem,
                                    vmem_limit_bytes=limit)

    # ---- pass 1: GroupNorm stats -> per-channel scale / shift -------------
    ws1 = c * hw * f32 + (6 * c + 2 * c * g) * f32
    scale, shift = pl.pallas_call(
        functools.partial(gn_stats_kernel, eps=eps),
        out_shape=(jax.ShapeDtypeStruct((b, c, 1), jnp.float32),
                   jax.ShapeDtypeStruct((b, c, 1), jnp.float32)),
        grid_spec=pltpu.PrefetchScalarGridSpec(
            num_scalar_prefetch=0,
            grid=(b,),
            in_specs=[pl.BlockSpec((1, c, hw), lambda i: (i, 0, 0)),
                      pl.BlockSpec((c, 1), lambda i: (0, 0)),
                      pl.BlockSpec((c, 1), lambda i: (0, 0)),
                      pl.BlockSpec((c, g), lambda i: (0, 0)),
                      pl.BlockSpec((g, c), lambda i: (0, 0))],
            out_specs=[pl.BlockSpec((1, c, 1), lambda i: (i, 0, 0)),
                       pl.BlockSpec((1, c, 1), lambda i: (i, 0, 0))]),
        compiler_params=cparams(("parallel",), ws1),
    )(x, gamma, beta, m, mt)

    # ---- pass 2: fused QKV projection, tiled over HW ----------------------
    ws2 = c * thw * f32 + 3 * c * c * bf16 + 3 * c * thw * bf16 + 8 * c * f32
    q, k, v = pl.pallas_call(
        qkv_kernel,
        out_shape=(jax.ShapeDtypeStruct((b, hw, c), jnp.bfloat16),   # q (pos-major)
                   jax.ShapeDtypeStruct((b, c, hw), jnp.bfloat16),   # k
                   jax.ShapeDtypeStruct((b, c, hw), jnp.bfloat16)),  # v
        grid_spec=pltpu.PrefetchScalarGridSpec(
            num_scalar_prefetch=0,
            grid=(b, hw // thw),
            in_specs=[pl.BlockSpec((1, c, thw), lambda i, t: (i, 0, t)),
                      pl.BlockSpec((1, c, 1), lambda i, t: (i, 0, 0)),
                      pl.BlockSpec((1, c, 1), lambda i, t: (i, 0, 0)),
                      pl.BlockSpec((3 * c, c), lambda i, t: (0, 0)),
                      pl.BlockSpec((3 * c, 1), lambda i, t: (0, 0))],
            out_specs=[pl.BlockSpec((1, thw, c), lambda i, t: (i, t, 0)),
                       pl.BlockSpec((1, c, thw), lambda i, t: (i, 0, t)),
                       pl.BlockSpec((1, c, thw), lambda i, t: (i, 0, t))]),
        compiler_params=cparams(("parallel", "parallel"), ws2),
    )(x, scale, shift, wqkv, bqkv)

    # ---- pass 3: flash attention + proj_out + residual --------------------
    ws3 = (c * tq * f32 + tq * c * bf16 + 2 * c * tk * bf16 + c * c * bf16
           + c * f32 + c * tq * f32 + (2 * tq + tq * c) * f32)
    out = pl.pallas_call(
        functools.partial(flash_attn_kernel, sm_scale=float(int(c) ** (-0.5))),
        out_shape=jax.ShapeDtypeStruct((b, c, hw), jnp.float32),
        grid_spec=pltpu.PrefetchScalarGridSpec(
            num_scalar_prefetch=0,
            grid=(b, hw // tq, hw // tk),
            in_specs=[pl.BlockSpec((1, c, tq), lambda i, qi, ki: (i, 0, qi)),  # x
                      pl.BlockSpec((1, tq, c), lambda i, qi, ki: (i, qi, 0)),  # q
                      pl.BlockSpec((1, c, tk), lambda i, qi, ki: (i, 0, ki)),  # k
                      pl.BlockSpec((1, c, tk), lambda i, qi, ki: (i, 0, ki)),  # v
                      pl.BlockSpec((c, c), lambda i, qi, ki: (0, 0)),          # Wp
                      pl.BlockSpec((c, 1), lambda i, qi, ki: (0, 0))],         # bp
            out_specs=pl.BlockSpec((1, c, tq), lambda i, qi, ki: (i, 0, qi)),
            scratch_shapes=[pltpu.VMEM((tq, 1), jnp.float32),   # running max
                            pltpu.VMEM((tq, 1), jnp.float32),   # running sum
                            pltpu.VMEM((tq, c), jnp.float32)]), # output acc
        compiler_params=cparams(("parallel", "parallel", "arbitrary"), ws3),
    )(x, q, k, v, wp, bp)

    return out.reshape(b, c, h, w)


# ---------------------------------------------------------------- reference -

def attn_block_ref(x_nchw, params, *, num_groups=32, eps=1e-6):
    """Pure-JAX reference mirroring the PyTorch forward exactly (fp32)."""
    b, c, h, w = x_nchw.shape
    xg = x_nchw.reshape(b, num_groups, c // num_groups, h, w)
    mean = xg.mean(axis=(2, 3, 4), keepdims=True)
    var = xg.var(axis=(2, 3, 4), keepdims=True)
    hn = ((xg - mean) / jnp.sqrt(var + eps)).reshape(b, c, h, w)
    hn = hn * params["gamma"].reshape(1, c, 1, 1) + params["beta"].reshape(1, c, 1, 1)

    def conv1x1(t, wname, bname):
        wm = params[wname].reshape(c, c)           # (C_out, C_in)
        return jnp.einsum("oc,bchw->bohw", wm, t) + params[bname].reshape(1, c, 1, 1)

    q = conv1x1(hn, "wq", "bq").reshape(b, c, h * w).transpose(0, 2, 1)
    k = conv1x1(hn, "wk", "bk").reshape(b, c, h * w)
    v = conv1x1(hn, "wv", "bv").reshape(b, c, h * w)
    w_ = jnp.einsum("bic,bcj->bij", q, k) * (int(c) ** (-0.5))
    w_ = jax.nn.softmax(w_, axis=2)
    h_ = jnp.einsum("bcj,bij->bci", v, w_).reshape(b, c, h, w)
    h_ = conv1x1(h_, "wp", "bp")
    return x_nchw + h_


def init_params(key, c):
    ks = jax.random.split(key, 10)
    s = 1.0 / jnp.sqrt(c)
    p = {
        "gamma": 1.0 + 0.05 * jax.random.normal(ks[0], (c,), jnp.float32),
        "beta": 0.05 * jax.random.normal(ks[1], (c,), jnp.float32),
    }
    for i, nm in enumerate(["q", "k", "v", "p"]):
        p["w" + nm] = jax.random.uniform(ks[2 + 2 * i], (c, c, 1, 1),
                                         jnp.float32, -s, s)
        p["b" + nm] = jax.random.uniform(ks[3 + 2 * i], (c,),
                                         jnp.float32, -s, s)
    return p


if __name__ == "__main__":
    B, C, H, W = 2, 64, 16, 16   # C must be divisible by num_groups=32
    key = jax.random.PRNGKey(0)
    kx, kp = jax.random.split(key)
    x = jax.random.normal(kx, (B, C, H, W), jnp.float32)
    params = init_params(kp, C)

    # Small tiles so the test exercises the multi-step online softmax path.
    out = jax.block_until_ready(attn_block(x, params, tq=128, tk=128, thw=128))
    ref = jax.block_until_ready(attn_block_ref(x, params))

    assert out.shape == (B, C, H, W)
    err = float(jnp.max(jnp.abs(out - ref)))
    # bf16 MXU inputs with fp32 accumulation -> relaxed tolerance vs fp32 ref.
    assert jnp.allclose(out, ref, atol=3e-2, rtol=3e-2), err
    print("KERNEL_OK")
</pallas_src>

<mosaic_0001>
module attributes {stable_mosaic.version = 11 : i64} {
  func.func @gn_stats_kernel(%arg0: i32, %arg1: memref<1x64x256xf32, #tpu.memory_space<vmem>>, %arg2: memref<64x1xf32, #tpu.memory_space<vmem>>, %arg3: memref<64x1xf32, #tpu.memory_space<vmem>>, %arg4: memref<64x32xf32, #tpu.memory_space<vmem>>, %arg5: memref<32x64xf32, #tpu.memory_space<vmem>>, %arg6: memref<1x64x1xf32, #tpu.memory_space<vmem>>, %arg7: memref<1x64x1xf32, #tpu.memory_space<vmem>>) attributes {dimension_semantics = [#tpu.dimension_semantics<parallel>], iteration_bounds = array<i64: 2>, scalar_prefetch = 0 : i64, scratch_operands = 0 : i64, tpu.core_type = #tpu.core_type<tc>, window_params = [{transform_indices = @transform_0, window_bounds = array<i64: 1, 64, 256>}, {pipeline_mode = #tpu.pipeline_mode<synchronous>, transform_indices = @transform_1, window_bounds = array<i64: 64, 1>}, {pipeline_mode = #tpu.pipeline_mode<synchronous>, transform_indices = @transform_2, window_bounds = array<i64: 64, 1>}, {pipeline_mode = #tpu.pipeline_mode<synchronous>, transform_indices = @transform_3, window_bounds = array<i64: 64, 32>}, {pipeline_mode = #tpu.pipeline_mode<synchronous>, transform_indices = @transform_4, window_bounds = array<i64: 32, 64>}, {transform_indices = @transform_5, window_bounds = array<i64: 1, 64, 1>}, {transform_indices = @transform_6, window_bounds = array<i64: 1, 64, 1>}]} {
    %c0 = arith.constant 0 : index
    %c0_0 = arith.constant 0 : index
    %c0_1 = arith.constant 0 : index
    %0 = vector.load %arg1[%c0, %c0_0, %c0_1] : memref<1x64x256xf32, #tpu.memory_space<vmem>>, vector<1x64x256xf32>
    %1 = vector.shape_cast %0 : vector<1x64x256xf32> to vector<64x256xf32>
    %cst = arith.constant dense<0.000000e+00> : vector<64xf32>
    %2 = vector.multi_reduction <add>, %1, %cst [1] : vector<64x256xf32> to vector<64xf32>
    %3 = vector.shape_cast %2 : vector<64xf32> to vector<64x1xf32>
    %c0_2 = arith.constant 0 : index
    %c0_3 = arith.constant 0 : index
    %4 = vector.load %arg5[%c0_2, %c0_3] : memref<32x64xf32, #tpu.memory_space<vmem>>, vector<32x64xf32>
    %cst_4 = arith.constant dense<0.000000e+00> : vector<32x1xf32>
    %5 = tpu.matmul %4, %3, %cst_4 {dimension_numbers = #tpu.dot_dimension_numbers<[1], [0], [0], [1], [0, 0, 1, 1], [], []>} : vector<32x64xf32>, vector<64x1xf32>, vector<32x1xf32> -> vector<32x1xf32>
    %cst_5 = arith.constant 5.120000e+02 : f32
    %6 = vector.broadcast %cst_5 : f32 to vector<32x1xf32>
    %7 = arith.divf %5, %6 : vector<32x1xf32>
    %c0_6 = arith.constant 0 : index
    %c0_7 = arith.constant 0 : index
    %8 = vector.load %arg4[%c0_6, %c0_7] : memref<64x32xf32, #tpu.memory_space<vmem>>, vector<64x32xf32>
    %cst_8 = arith.constant dense<0.000000e+00> : vector<64x1xf32>
    %9 = tpu.matmul %8, %7, %cst_8 {dimension_numbers = #tpu.dot_dimension_numbers<[1], [0], [0], [1], [0, 0, 1, 1], [], []>} : vector<64x32xf32>, vector<32x1xf32>, vector<64x1xf32> -> vector<64x1xf32>
    %10 = vector.broadcast %9 : vector<64x1xf32> to vector<64x256xf32>
    %11 = arith.subf %1, %10 : vector<64x256xf32>
    %12 = arith.mulf %11, %11 : vector<64x256xf32>
    %cst_9 = arith.constant dense<0.000000e+00> : vector<64xf32>
    %13 = vector.multi_reduction <add>, %12, %cst_9 [1] : vector<64x256xf32> to vector<64xf32>
    %14 = vector.shape_cast %13 : vector<64xf32> to vector<64x1xf32>
    %c0_10 = arith.constant 0 : index
    %c0_11 = arith.constant 0 : index
    %15 = vector.load %arg5[%c0_10, %c0_11] : memref<32x64xf32, #tpu.memory_space<vmem>>, vector<32x64xf32>
    %cst_12 = arith.constant dense<0.000000e+00> : vector<32x1xf32>
    %16 = tpu.matmul %15, %14, %cst_12 {dimension_numbers = #tpu.dot_dimension_numbers<[1], [0], [0], [1], [0, 0, 1, 1], [], []>} : vector<32x64xf32>, vector<64x1xf32>, vector<32x1xf32> -> vector<32x1xf32>
    %cst_13 = arith.constant 5.120000e+02 : f32
    %17 = vector.broadcast %cst_13 : f32 to vector<32x1xf32>
    %18 = arith.divf %16, %17 : vector<32x1xf32>
    %c0_14 = arith.constant 0 : index
    %c0_15 = arith.constant 0 : index
    %19 = vector.load %arg4[%c0_14, %c0_15] : memref<64x32xf32, #tpu.memory_space<vmem>>, vector<64x32xf32>
    %cst_16 = arith.constant dense<0.000000e+00> : vector<64x1xf32>
    %20 = tpu.matmul %19, %18, %cst_16 {dimension_numbers = #tpu.dot_dimension_numbers<[1], [0], [0], [1], [0, 0, 1, 1], [], []>} : vector<64x32xf32>, vector<32x1xf32>, vector<64x1xf32> -> vector<64x1xf32>
    %cst_17 = arith.constant 9.99999997E-7 : f32
    %21 = vector.broadcast %cst_17 : f32 to vector<64x1xf32>
    %22 = arith.addf %20, %21 : vector<64x1xf32>
    %23 = math.rsqrt %22 : vector<64x1xf32>
    %c0_18 = arith.constant 0 : index
    %c0_19 = arith.constant 0 : index
    %24 = vector.load %arg2[%c0_18, %c0_19] : memref<64x1xf32, #tpu.memory_space<vmem>>, vector<64x1xf32>
    %25 = arith.mulf %24, %23 : vector<64x1xf32>
    %c0_20 = arith.constant 0 : index
    %c0_21 = arith.constant 0 : index
    %c0_22 = arith.constant 0 : index
    %26 = vector.load %arg6[%c0_20, %c0_21, %c0_22] : memref<1x64x1xf32, #tpu.memory_space<vmem>>, vector<1x64x1xf32>
    %27 = vector.shape_cast %26 : vector<1x64x1xf32> to vector<64x1xf32>
    %28 = vector.shape_cast %25 : vector<64x1xf32> to vector<1x64x1xf32>
    tpu.vector_store %arg6[%c0_20, %c0_21, %c0_22], %28 {strides = array<i32>} : memref<1x64x1xf32, #tpu.memory_space<vmem>>, vector<1x64x1xf32>,
    %c0_23 = arith.constant 0 : index
    %c0_24 = arith.constant 0 : index
    %29 = vector.load %arg3[%c0_23, %c0_24] : memref<64x1xf32, #tpu.memory_space<vmem>>, vector<64x1xf32>
    %30 = arith.mulf %9, %25 : vector<64x1xf32>
    %31 = arith.subf %29, %30 : vector<64x1xf32>
    %c0_25 = arith.constant 0 : index
    %c0_26 = arith.constant 0 : index
    %c0_27 = arith.constant 0 : index
    %32 = vector.load %arg7[%c0_25, %c0_26, %c0_27] : memref<1x64x1xf32, #tpu.memory_space<vmem>>, vector<1x64x1xf32>
    %33 = vector.shape_cast %32 : vector<1x64x1xf32> to vector<64x1xf32>
    %34 = vector.shape_cast %31 : vector<64x1xf32> to vector<1x64x1xf32>
    tpu.vector_store %arg7[%c0_25, %c0_26, %c0_27], %34 {strides = array<i32>} : memref<1x64x1xf32, #tpu.memory_space<vmem>>, vector<1x64x1xf32>,
    return
  }
  func.func @transform_0(%arg0: i32) -> (i32, i32, i32) {
    %c0_i32 = arith.constant 0 : i32
    %c0_i32_0 = arith.constant 0 : i32
    %c0_i32_1 = arith.constant 0 : i32
    return %arg0, %c0_i32, %c0_i32_0 : i32, i32, i32
  }
  func.func @transform_1(%arg0: i32) -> (i32, i32) {
    %c0_i32 = arith.constant 0 : i32
    %c0_i32_0 = arith.constant 0 : i32
    %c0_i32_1 = arith.constant 0 : i32
    return %c0_i32, %c0_i32_0 : i32, i32
  }
  func.func @transform_2(%arg0: i32) -> (i32, i32) {
    %c0_i32 = arith.constant 0 : i32
    %c0_i32_0 = arith.constant 0 : i32
    %c0_i32_1 = arith.constant 0 : i32
    return %c0_i32, %c0_i32_0 : i32, i32
  }
  func.func @transform_3(%arg0: i32) -> (i32, i32) {
    %c0_i32 = arith.constant 0 : i32
    %c0_i32_0 = arith.constant 0 : i32
    %c0_i32_1 = arith.constant 0 : i32
    return %c0_i32, %c0_i32_0 : i32, i32
  }
  func.func @transform_4(%arg0: i32) -> (i32, i32) {
    %c0_i32 = arith.constant 0 : i32
    %c0_i32_0 = arith.constant 0 : i32
    %c0_i32_1 = arith.constant 0 : i32
    return %c0_i32, %c0_i32_0 : i32, i32
  }
  func.func @transform_5(%arg0: i32) -> (i32, i32, i32) {
    %c0_i32 = arith.constant 0 : i32
    %c0_i32_0 = arith.constant 0 : i32
    %c0_i32_1 = arith.constant 0 : i32
    return %arg0, %c0_i32, %c0_i32_0 : i32, i32, i32
  }
  func.func @transform_6(%arg0: i32) -> (i32, i32, i32) {
    %c0_i32 = arith.constant 0 : i32
    %c0_i32_0 = arith.constant 0 : i32
    %c0_i32_1 = arith.constant 0 : i32
    return %arg0, %c0_i32, %c0_i32_0 : i32, i32, i32
  }
}

</mosaic_0001>

<bundles_post_ra>
// kernel: tpu_custom_call.1
= control target key start
LH: loop header
LB: loop body
LE: loop exit
PB: predicated region body
PF: predicated region fallthrough
CT: control target
= control target key end

     0   :  { %12 = vsyncpa [#allocation3], 0  ;;  %s1813_s0 = inlined_call_operand.hbm [shape: f32[2,64,256], index: 0, kind: input, shape index: {}]   ;;  %s1814_s1 = inlined_call_operand.vmem [shape: f32[64,1], index: 1, kind: input, shape index: {}]   ;;  %s1815_s2 = inlined_call_operand.vmem [shape: f32[64,1], index: 2, kind: input, shape index: {}]   ;;  %s1816_s3 = inlined_call_operand.vmem [shape: f32[64,32], index: 3, kind: input, shape index: {}]   ;;  %s1817_s4 = inlined_call_operand.vmem [shape: f32[32,64], index: 4, kind: input, shape index: {}]   ;;  %s1818_s5 = inlined_call_operand.vmem [shape: f32[2,64,1], index: 5, kind: output, shape index: {0}]   ;;  %s1819_s6 = inlined_call_operand.vmem [shape: f32[2,64,1], index: 6, kind: output, shape index: {1}]  }
   0x1   :  { %14 = vsyncpa [#allocation3 + $0x1], 0  ;;  %s1415_s21 = smov 0   ;;  %s1417_s22 = smov 0  }
   0x2   :  { %s1419_s23 = smov 0   ;;  %s1421_s24 = smov 0  }
   0x3 LB: > { %s1434_s25 = sadd.s32 4294967295, %s1374_s24   ;;  %s1437_s26 = sadd.s32 1, %s1374_s24   ;;  %s1374_s24 = sphi %s1421_s24, %s1826_s24   ;;  %s1370_s23 = sphi %s1419_s23, %s1825_s23   ;;  %s1366_s22 = sphi %s1417_s22, %s1824_s22   ;;  %s1362_s21 = sphi %s1415_s21, %s1823_s21  }
   0x4   : > { %s24_s27 = ssub.s32 %s1374_s24, %s1437_s26  ;;  %s27_s28 = sadd.s32 1, %s1370_s23 }
   0x5   : > { %p25_p0 = scmp.eq.s32.totalorder %s24_s27, 0  ;;  %p34_p1 = scmp.ne.s32.totalorder %s1370_s23, %s1366_s22 }
   0x6   : > { %p35_p2 = scmp.eq.s32.totalorder %s1374_s24, 0  ;;  %p40_p3 = scmp.ne.s32.totalorder %s1366_s22, %s1362_s21 }
   0x7   : > { %s1447_s29 = scalar_select %p25_p0, %s1370_s23, %s27_s28  }
   0x8   : > { %p36_p4 = por %p35_p2, %p34_p1  ;;  %p41_p5 = scmp.eq.s32.totalorder %s1434_s25, 0 }
   0x9   : > { %p1256_p6 = scmp.lt.s32.totalorder %s1374_s24, 2  ;;  %s212_s7 = sand.u32 1, %s1370_s23  }
   0xa   : > { %p1451_p7 = por %p41_p5, %p40_p3  ;;  %s1028_s8 = sshll.u32 %s212_s7, 7 }
   0xb   : > { %s1063_s9 = sshll.u32 %s1374_s24, 11  ;;  %s216_s13 = scalar_lea.vmem [#allocation2], %s1028_s8 }
   0xc   : > { %s1460_s12 = scalar_lea.hbm %s1813_s0, %s1063_s9  ;;  %s223_s14 = sshll.u32 %s216_s13, 4  ;;  %s1462_s14 = int_to_ptr.vmem [resolvable:$true] %s223_s14 }
   0xd   : > { %p1464_p8 = pnand %p1256_p6, %p36_p4  ;;  %s1469_s16 = scalar_lea.sflag [#allocation3], %s212_s7 }
   0xe   : > { %s1310_s17 = scalar_lea.hbm %s1460_s12, 2048  ;;  %s1315_s20 = scalar_lea.hbm %s1813_s0, 4096 }
   0xf   : > { %p1311_p10 = scmp.ne.s32.totalorder %s1460_s12, %s1310_s17  ;;  %p1312_p11 = pneg %p1464_p8 }
  0x10   : > { %p1316_p0 = scmp.lt.u32.totalorder %s1460_s12, %s1813_s0  ;;  %p1317_p1 = scmp.lt.u32.totalorder %s1315_s20, %s1310_s17 }
  0x11   : > { %p1313_p12 = pnand %p1312_p11, %p1311_p10  ;;  %p1319_p3 = scmp.lt.u32.totalorder %s1310_s17, %s1460_s12 }
  0x12   : > { %p1318_p2 = por %p1317_p1, %p1316_p0 }
  0x13   : > { %p1314_p13 = pneg %p1313_p12 }
  0x14   : > { %p1320_p4 = por %p1319_p3, %p1318_p2 }
  0x16   : > { %p1321_p5 = pnand %p1320_p4, %p1314_p13 }
  0x18   : > { %1324 = shalt.err (!%p1321_p5)
}
  0x19   : > { %s1325_s28 = scalar_lea.vmem %s1462_s14, 2048  ;;  %s1376_s7 = smov [#allocation2]  }
  0x1a   : > { %p1326_p6 = scmp.ne.s32.totalorder %s1462_s14, %s1325_s28  ;;  %s1330_s8 = sshll.u32 %s1376_s7, 4  ;;  %s1331_s8 = int_to_ptr.vmem [resolvable:$false] %s1330_s8 }
  0x1b   : > { %s1332_s9 = scalar_lea.vmem %s1331_s8, 4096  ;;  %p1333_p9 = scmp.lt.s32.totalorder %s1462_s14, %s1331_s8 }
  0x1c   : > { %p1328_p10 = pnand %p1326_p6, %p1312_p11  ;;  %p1334_p0 = scmp.lt.s32.totalorder %s1332_s9, %s1325_s28 }
  0x1e   : > { %p1329_p12 = pneg %p1328_p10  ;;  %p1335_p1 = por %p1334_p0, %p1333_p9 }
  0x20   : > { %p1336_p2 = pnand %p1335_p1, %p1329_p12 }
  0x22   : > { %1339 = shalt.err (!%p1336_p2)
}
  0x23   : > { %s1377_s10 = smov 256   ;;  %s1378_s11 = smov 16  }
  0x24   : > { %1255 = dma.hbm_to_vmem [thread:$0]  (!%p1464_p8), %s1460_s12, 2048, %s1462_s14, %s1469_s16, %s1377_s10, %s1377_s10, %s1378_s11  }
  0x25   : > { %p231_p11 = scmp.lt.s32.totalorder %s1374_s24, 3  ;;  %p1822_p13 = scmp.ge.s32.totalorder %s1374_s24, 1 }
  0x27   : > { %p232_p3 = pnand %p1822_p13, %p231_p11 }
  0x28   : > { %s237_s13 = sand.u32 (!%p232_p3), 1, %s1366_s22  }
  0x29   : > { %235 = sbr.rel (%p232_p3) target bundleno = 1426 (0x592), region = 40  ;;  %s1032_s17 = sshll.u32 (!%p232_p3), %s237_s13, 7 }
  0x2a   : > { %s238_s18 = scalar_lea.sflag (!%p232_p3), [#allocation3], %s237_s13  ;;  %s241_s19 = scalar_lea.vmem (!%p232_p3), [#allocation2], %s1032_s17 }
  0x30   : > { %1357 = dma.done.wait (%p1451_p7), %s238_s18, 2048  }
  0x31   : > { %1359 = vsyncadd (%p1451_p7), %s238_s18, 4294965248  ;;  %v1505_v0 = vld [vmem:[%s241_s19 + $0x20] sm:$0xff]  ;;  %v1507_v1 = vld [vmem:[%s241_s19 + $0x28] sm:$0xff]  ;;  %vm329_vm0 = vcmask 523264   ;;  %vm440_vm1 = vcmask 261120   ;;  %v1379_v41 = vmov 0  }
  0x32   : > { %v1509_v2 = vld [vmem:[%s241_s19] sm:$0xff]  ;;  %v307_v3 = vadd.f32 %v1507_v1, %v1505_v0  ;;  %v1513_v4 = vld [vmem:[%s241_s19 + $0x8] sm:$0xff]  ;;  %v1515_v5 = vld [vmem:[%s241_s19 + $0x30] sm:$0xff]  ;;  %1293 = vset.pattern.permute.xlu1 %v1379_v41  ;;  %1292 = vset.pattern.permute.xlu0 %v1379_v41  ;;  %p275_p7 = scmp.lt.s32.totalorder %s1434_s25, 1  ;;  %vm884_vm2 = vcmask 7168  }
  0x33   : > { %v1517_v6 = vld [vmem:[%s241_s19 + $0x38] sm:$0xff]  ;;  %v301_v7 = vadd.f32 %v1513_v4, %v1509_v2  ;;  %v1521_v8 = vld [vmem:[%s241_s19 + $0x10] sm:$0xff]  ;;  %v1533_v14 = vld [vmem:[%s241_s19 + $0x40] sm:$0xff] }
  0x34   : > { %v1523_v9 = vld [vmem:[%s241_s19 + $0x18] sm:$0xff]  ;;  %308 = vadd.xlane.f32.xlu1 %v307_v3  ;;  %v310_v10 = vadd.f32 %v1517_v6, %v1515_v5  ;;  %v1529_v12 = vld [vmem:[%s241_s19 + $0x50] sm:$0xff]  ;;  %v1535_v15 = vld [vmem:[%s241_s19 + $0x48] sm:$0xff]  ;;  %s1828_s25 = smov (!%p275_p7, %s1434_s25), 1 }
  0x35   : > { %302 = vadd.xlane.f32.xlu0 %v301_v7  ;;  %v304_v11 = vadd.f32 %v1523_v9, %v1521_v8  ;;  %v1531_v13 = vld [vmem:[%s241_s19 + $0x58] sm:$0xff]  ;;  %v313_v17 = vadd.f32 %v1535_v15, %v1533_v14  ;;  %v1541_v18 = vld [vmem:[%s241_s19 + $0x70] sm:$0xff]  ;;  %v1545_v20 = vld [vmem:[%s241_s19 + $0x60] sm:$0xff]  ;;  %s1064_s16 = sshll.u32 %s1828_s25, 6 }
  0x36   : > { %v316_v16 = vadd.f32 %v1531_v13, %v1529_v12  ;;  %v1543_v19 = vld [vmem:[%s241_s19 + $0x78] sm:$0xff]  ;;  %v1547_v21 = vld [vmem:[%s241_s19 + $0x68] sm:$0xff]  ;;  %v1556_v24 = vld [vmem:[%s1817_s4] sm:$0xff]  ;;  %s1711_s9 = scalar_lea.vmem %s1818_s5, %s1064_s16  ;;  %s1737_s27 = scalar_lea.vmem %s1819_s6, %s1064_s16 }
  0x37   : > { %v322_v22 = vadd.f32 %v1543_v19, %v1541_v18  ;;  %v319_v23 = vadd.f32 %v1547_v21, %v1545_v20  ;;  %1130 = vmatprep.mubr.msk.f32.mxu0 %vm329_vm0, %v1556_v24  ;;  %v1563_v37 = vld [vmem:[%s1817_s4 + $0x8] sm:$0xff]  ;;  %v1568_v38 = vld [vmem:[%s1817_s4 + $0x10] sm:$0xff]  ;;  %v1577_v39 = vld [vmem:[%s1817_s4 + $0x18] sm:$0xff] }
  0x38   : > { %311 = vadd.xlane.f32.xlu1 %v310_v10  ;;  %v432_v40 = vld [vmem:[%s1816_s3] sm:$0xff]  ;;  %v1589_v52 = vld [vmem:[%s1816_s3 + $0x8] sm:$0xff]  ;;  %v1594_v53 = vld [vmem:[%s1816_s3 + $0x10] sm:$0xff] }
  0x39   : > { %305 = vadd.xlane.f32.xlu0 %v304_v11  ;;  %1144 = vmatprep.mubr.msk.f32.mxu1 %vm440_vm1, %v432_v40  ;;  %v1603_v54 = vld [vmem:[%s1816_s3 + $0x18] sm:$0xff]  ;;  %v1608_v55 = vld [vmem:[%s1816_s3 + $0x20] sm:$0xff]  ;;  %v1617_v56 = vld [vmem:[%s1816_s3 + $0x28] sm:$0xff] }
  0x3a   : > { %v1622_v57 = vld [vmem:[%s1816_s3 + $0x30] sm:$0xff]  ;;  %v1631_v58 = vld [vmem:[%s1816_s3 + $0x38] sm:$0xff] }
  0x3c   : > { %317 = vadd.xlane.f32.xlu1 %v316_v16 }
  0x3d   : > { %314 = vadd.xlane.f32.xlu0 %v313_v17 }
  0x40   : > { %323 = vadd.xlane.f32.xlu1 %v322_v22 }
  0x41   : > { %320 = vadd.xlane.f32.xlu0 %v319_v23 }
  0xc1   : > { %v309_v25 = vpop.xlane.xlu1 %308 }
  0xc2   : > { %v303_v26 = vpop.xlane.xlu0 %302 }
  0xc5   : > { %v312_v27 = vpop.xlane.xlu1 %311 }
  0xc6   : > { %v306_v28 = vpop.xlane.xlu0 %305  ;;  %v1202_v30 = vpack.c.bf16 %v312_v27, %v309_v25 }
  0xc7   : > { %v1198_v29 = vpack.c.bf16 %v306_v28, %v303_v26 }
  0xc9   : > { %1199 = vmatprep.subr.bf16.mxu0 %v1198_v29  ;;  %v318_v31 = vpop.xlane.xlu1 %317 }
  0xca   : > { %1201 = vmatpush3.bf16.msra.mxu0 %v1198_v29  ;;  %v315_v32 = vpop.xlane.xlu0 %314 }
  0xcb   : > { %1203 = vmatprep.subr.bf16.mxu0 %v1202_v30  ;;  %v1206_v33 = vpack.c.bf16 %v318_v31, %v315_v32 }
  0xcd   : > { %v324_v34 = vpop.xlane.xlu1 %323 }
  0xce   : > { %1205 = vmatpush3.bf16.msra.mxu0 %v1202_v30  ;;  %v321_v35 = vpop.xlane.xlu0 %320 }
  0xcf   : > { %1207 = vmatprep.subr.bf16.mxu0 %v1206_v33  ;;  %v1210_v36 = vpack.c.bf16 %v324_v34, %v321_v35 }
  0xd2   : > { %1209 = vmatpush3.bf16.msra.mxu0 %v1206_v33 }
  0xd3   : > { %1211 = vmatprep.subr.bf16.mxu0 %v1210_v36 }
  0xd6   : > { %1213 = vmatpush3.bf16.msra.mxu0 %v1210_v36 }
  0xd9   : > { %1131 = vmatmul.mubr.msk.f32.vlgmr.msra.gmra.mrb[0].mxu0 %vm329_vm0, %v1563_v37 }
  0xda   : > { %1133 = vmatprep.mubr.msk.f32.mxu0 %vm329_vm0, %v1568_v38 }
  0xdd   : > { %1134 = vmatmul.mubr.msk.f32.gmra.mrb[2].mxu0 %vm329_vm0, %v1577_v39 }
  0xde   : > { %1186 = vmatprep.mubr.msk.f32.mxu0 %vm440_vm1, %v432_v40 }
 0x1ac   : > { %v1132_v42 = vpop.f32.mrb[0].mxu0 }
 0x1ad   : > { %v429_v43 = vmul.f32 0.001953125, %v1132_v42  ;;  %v408_v44 = vpop.f32.mrb[1].mxu0 }
 0x1ae   : > { %v428_v45 = vmul.f32 0.001953125, %v408_v44 }
 0x1b0   : > { %v1135_v46 = vpop.f32.mrb[2].mxu0  ;;  %v1214_v47 = vpack.c.bf16 %v429_v43, %v428_v45 }
 0x1b1   : > { %v431_v48 = vmul.f32 0.001953125, %v1135_v46  ;;  %v418_v49 = vpop.f32.mrb[3].mxu0 }
 0x1b2   : > { %v430_v50 = vmul.f32 0.001953125, %v418_v49  ;;  %1215 = vmatprep.subr.bf16.mxu1 %v1214_v47 }
 0x1b3   : > { %1217 = vmatpush3.bf16.msra.mxu1 %v1214_v47 }
 0x1b4   : > { %v1218_v51 = vpack.c.bf16 %v431_v48, %v430_v50 }
 0x1b6   : > { %1219 = vmatprep.subr.bf16.mxu1 %v1218_v51 }
 0x1b7   : > { %1221 = vmatpush3.bf16.msra.mxu1 %v1218_v51 }
 0x1ba   : > { %1145 = vmatmul.mubr.msk.f32.vlgmr.msra.gmra.mrb[0].mxu1 %vm440_vm1, %v1589_v52 }
 0x1bb   : > { %1147 = vmatprep.mubr.msk.f32.mxu1 %vm440_vm1, %v1594_v53 }
 0x1be   : > { %1148 = vmatmul.mubr.msk.f32.gmra.mrb[2].mxu1 %vm440_vm1, %v1603_v54 }
 0x1bf   : > { %1150 = vmatprep.mubr.msk.f32.mxu1 %vm440_vm1, %v1608_v55 }
 0x1c2   : > { %1151 = vmatmul.mubr.msk.f32.gmra.mrb[4].mxu1 %vm440_vm1, %v1617_v56 }
 0x1c3   : > { %1153 = vmatprep.mubr.msk.f32.mxu1 %vm440_vm1, %v1622_v57 }
 0x1c6   : > { %1154 = vmatmul.mubr.msk.f32.gmra.mrb[6].mxu1 %vm440_vm1, %v1631_v58 }
 0x1c7   : > { %1172 = vmatprep.mubr.msk.f32.mxu1 %vm329_vm0, %v1556_v24 }
 0x28d   : > { %v1637_v59 = vpop.f32.mrb[0].mxu1 }
 0x28e   : > { %577 = vperm.xlu1 %1293, %v1637_v59   ;;  %v1640_v60 = vpop.f32.mrb[1].mxu1 }
 0x28f   : > { %572 = vperm.xlu0 %1292, %v1640_v60  }
 0x291   : > { %v1643_v61 = vpop.f32.mrb[2].mxu1 }
 0x292   : > { %587 = vperm.xlu1 %1293, %v1643_v61   ;;  %v1646_v62 = vpop.f32.mrb[3].mxu1 }
 0x295   : > { %v1648_v63 = vpop.f32.mrb[4].mxu1 }
 0x296   : > { %582 = vperm.xlu1 %1293, %v1646_v62   ;;  %v1651_v3 = vpop.f32.mrb[5].mxu1 }
 0x299   : > { %v1653_v7 = vpop.f32.mrb[6].mxu1 }
 0x29a   : > { %597 = vperm.xlu1 %1293, %v1648_v63   ;;  %v1656_v10 = vpop.f32.mrb[7].mxu1 }
 0x29e   : > { %592 = vperm.xlu1 %1293, %v1651_v3  }
 0x2a2   : > { %602 = vperm.xlu1 %1293, %v1656_v10  }
 0x2a6   : > { %607 = vperm.xlu1 %1293, %v1653_v7  }
 0x30d   : > { %v578_v11 = vpop.permute.xlu1 %577 }
 0x30e   : > { %v612_v16 = vsub.f32 %v1521_v8, %v578_v11  ;;  %v613_v17 = vsub.f32 %v1523_v9, %v578_v11  ;;  %v573_v22 = vpop.permute.xlu0 %572 }
 0x30f   : > { %v610_v23 = vsub.f32 %v1509_v2, %v573_v22  ;;  %v611_v24 = vsub.f32 %v1513_v4, %v573_v22 }
 0x310   : > { %v628_v25 = vmul.f32 %v612_v16, %v612_v16  ;;  %v629_v26 = vmul.f32 %v613_v17, %v613_v17 }
 0x311   : > { %v626_v27 = vmul.f32 %v610_v23, %v610_v23  ;;  %v627_v28 = vmul.f32 %v611_v24, %v611_v24  ;;  %v588_v29 = vpop.permute.xlu1 %587 }
 0x312   : > { %v616_v30 = vsub.f32 %v1515_v5, %v588_v29  ;;  %v617_v31 = vsub.f32 %v1517_v6, %v588_v29  ;;  %v645_v32 = vadd.f32 %v629_v26, %v628_v25 }
 0x313   : > { %v642_v33 = vadd.f32 %v627_v28, %v626_v27 }
 0x314   : > { %v632_v34 = vmul.f32 %v616_v30, %v616_v30  ;;  %v633_v8 = vmul.f32 %v617_v31, %v617_v31  ;;  %646 = vadd.xlane.f32.xlu0 %v645_v32 }
 0x315   : > { %v583_v9 = vpop.permute.xlu1 %582  ;;  %643 = vadd.xlane.f32.xlu1 %v642_v33 }
 0x316   : > { %v614_v2 = vsub.f32 %v1505_v0, %v583_v9  ;;  %v615_v4 = vsub.f32 %v1507_v1, %v583_v9  ;;  %v651_v35 = vadd.f32 %v633_v8, %v632_v34 }
 0x318   : > { %v630_v36 = vmul.f32 %v614_v2, %v614_v2  ;;  %v631_v40 = vmul.f32 %v615_v4, %v615_v4 }
 0x319   : > { %v598_v41 = vpop.permute.xlu1 %597  ;;  %652 = vadd.xlane.f32.xlu1 %v651_v35 }
 0x31a   : > { %v620_v5 = vsub.f32 %v1529_v12, %v598_v41  ;;  %v621_v6 = vsub.f32 %v1531_v13, %v598_v41  ;;  %v648_v42 = vadd.f32 %v631_v40, %v630_v36 }
 0x31c   : > { %v636_v43 = vmul.f32 %v620_v5, %v620_v5  ;;  %v637_v44 = vmul.f32 %v621_v6, %v621_v6  ;;  %649 = vadd.xlane.f32.xlu0 %v648_v42 }
 0x31d   : > { %v593_v45 = vpop.permute.xlu1 %592 }
 0x31e   : > { %v618_v46 = vsub.f32 %v1533_v14, %v593_v45  ;;  %v619_v0 = vsub.f32 %v1535_v15, %v593_v45  ;;  %v657_v47 = vadd.f32 %v637_v44, %v636_v43 }
 0x320   : > { %v634_v1 = vmul.f32 %v618_v46, %v618_v46  ;;  %v635_v48 = vmul.f32 %v619_v0, %v619_v0  ;;  %658 = vadd.xlane.f32.xlu1 %v657_v47  ;;  %v869_v46 = vld [vmem:[%s1814_s1 + $0x8] sm:$0xff]  ;;  %v875_v0 = vld [vmem:[%s1814_s1 + $0x38] sm:$0xff] }
 0x321   : > { %v603_v49 = vpop.permute.xlu1 %602 }
 0x322   : > { %v622_v50 = vsub.f32 %v1545_v20, %v603_v49  ;;  %v623_v12 = vsub.f32 %v1547_v21, %v603_v49  ;;  %v654_v51 = vadd.f32 %v635_v48, %v634_v1  ;;  %v868_v1 = vld [vmem:[%s1814_s1] sm:$0xff] }
 0x324   : > { %v638_v13 = vmul.f32 %v622_v50, %v622_v50  ;;  %v639_v11 = vmul.f32 %v623_v12, %v623_v12  ;;  %655 = vadd.xlane.f32.xlu0 %v654_v51  ;;  %v874_v50 = vld [vmem:[%s1814_s1 + $0x30] sm:$0xff]  ;;  %v894_v51 = vld [vmem:[%s1815_s2 + $0x8] sm:$0xff] }
 0x325   : > { %v608_v16 = vpop.permute.xlu1 %607 }
 0x326   : > { %v624_v17 = vsub.f32 %v1541_v18, %v608_v16  ;;  %v625_v14 = vsub.f32 %v1543_v19, %v608_v16  ;;  %v660_v22 = vadd.f32 %v639_v11, %v638_v13  ;;  %v871_v11 = vld [vmem:[%s1814_s1 + $0x18] sm:$0xff] }
 0x328   : > { %v640_v15 = vmul.f32 %v624_v17, %v624_v17  ;;  %v641_v23 = vmul.f32 %v625_v14, %v625_v14  ;;  %661 = vadd.xlane.f32.xlu0 %v660_v22  ;;  %v900_v14 = vld [vmem:[%s1815_s2 + $0x38] sm:$0xff] }
 0x32a   : > { %v663_v24 = vadd.f32 %v641_v23, %v640_v15  ;;  %v870_v15 = vld [vmem:[%s1814_s1 + $0x10] sm:$0xff] }
 0x32c   : > { %664 = vadd.xlane.f32.xlu1 %v663_v24  ;;  %v893_v24 = vld [vmem:[%s1815_s2] sm:$0xff] }
 0x3a1   : > { %v647_v25 = vpop.xlane.xlu0 %646 }
 0x3a2   : > { %v644_v26 = vpop.xlane.xlu1 %643 }
 0x3a3   : > { %v1222_v20 = vpack.c.bf16 %v647_v25, %v644_v26 }
 0x3a5   : > { %1223 = vmatprep.subr.bf16.mxu1 %v1222_v20 }
 0x3a6   : > { %1225 = vmatpush3.bf16.msra.mxu1 %v1222_v20  ;;  %v653_v21 = vpop.xlane.xlu1 %652 }
 0x3a9   : > { %v650_v27 = vpop.xlane.xlu0 %649 }
 0x3aa   : > { %v1226_v28 = vpack.c.bf16 %v653_v21, %v650_v27  ;;  %v899_v27 = vld [vmem:[%s1815_s2 + $0x30] sm:$0xff] }
 0x3ac   : > { %1227 = vmatprep.subr.bf16.mxu1 %v1226_v28 }
 0x3ad   : > { %1229 = vmatpush3.bf16.msra.mxu1 %v1226_v28  ;;  %v659_v29 = vpop.xlane.xlu1 %658 }
 0x3b1   : > { %v656_v18 = vpop.xlane.xlu0 %655 }
 0x3b2   : > { %v1230_v30 = vpack.c.bf16 %v659_v29, %v656_v18  ;;  %v896_v18 = vld [vmem:[%s1815_s2 + $0x18] sm:$0xff] }
 0x3b4   : > { %1231 = vmatprep.subr.bf16.mxu1 %v1230_v30 }
 0x3b5   : > { %1233 = vmatpush3.bf16.msra.mxu1 %v1230_v30  ;;  %v662_v19 = vpop.xlane.xlu0 %661 }
 0x3b9   : > { %v665_v31 = vpop.xlane.xlu1 %664 }
 0x3ba   : > { %v1234_v32 = vpack.c.bf16 %v665_v31, %v662_v19 }
 0x3bc   : > { %1235 = vmatprep.subr.bf16.mxu1 %v1234_v32 }
 0x3bd   : > { %1237 = vmatpush3.bf16.msra.mxu1 %v1234_v32  ;;  %v872_v32 = vld [vmem:[%s1814_s1 + $0x20] sm:$0xff] }
 0x3c0   : > { %1173 = vmatmul.mubr.msk.f32.vlgmr.msra.gmra.mrb[8].mxu1 %vm329_vm0, %v1563_v37 }
 0x3c1   : > { %1175 = vmatprep.mubr.msk.f32.mxu1 %vm329_vm0, %v1568_v38 }
 0x3c4   : > { %1176 = vmatmul.mubr.msk.f32.gmra.mrb[10].mxu1 %vm329_vm0, %v1577_v39 }
 0x3c5   : > { %1195 = vmatprep.mubr.msk.f32.mxu1 %vm440_vm1, %v1622_v57 }
 0x493   : > { %v1174_v33 = vpop.f32.mrb[8].mxu1 }
 0x494   : > { %v752_v34 = vmul.f32 0.001953125, %v1174_v33  ;;  %v732_v8 = vpop.f32.mrb[9].mxu1 }
 0x495   : > { %v751_v9 = vmul.f32 0.001953125, %v732_v8 }
 0x497   : > { %v1238_v2 = vpack.c.bf16 %v752_v34, %v751_v9  ;;  %v1177_v4 = vpop.f32.mrb[10].mxu1 }
 0x498   : > { %v754_v35 = vmul.f32 0.001953125, %v1177_v4  ;;  %v742_v36 = vpop.f32.mrb[11].mxu1 }
 0x499   : > { %v753_v40 = vmul.f32 0.001953125, %v742_v36  ;;  %1239 = vmatprep.subr.bf16.mxu0 %v1238_v2  ;;  %1246 = vmatprep.subr.bf16.mxu1 %v1238_v2 }
 0x49a   : > { %1241 = vmatpush3.bf16.msra.mxu0 %v1238_v2  ;;  %1248 = vmatpush3.bf16.msra.mxu1 %v1238_v2 }
 0x49b   : > { %v1242_v37 = vpack.c.bf16 %v754_v35, %v753_v40  ;;  %v898_v35 = vld [vmem:[%s1815_s2 + $0x28] sm:$0xff]  ;;  %v897_v40 = vld [vmem:[%s1815_s2 + $0x20] sm:$0xff] }
 0x49d   : > { %1243 = vmatprep.subr.bf16.mxu0 %v1242_v37  ;;  %1247 = vmatprep.subr.bf16.mxu1 %v1242_v37 }
 0x49e   : > { %1245 = vmatpush3.bf16.msra.mxu0 %v1242_v37  ;;  %1249 = vmatpush3.bf16.msra.mxu1 %v1242_v37 }
 0x4a1   : > { %1187 = vmatmul.mubr.msk.f32.vlgmr.msra.gmra.mrb[4].mxu0 %vm440_vm1, %v1589_v52  ;;  %1196 = vmatmul.mubr.msk.f32.vlgmr.msra.gmra.mrb[12].mxu1 %vm440_vm1, %v1631_v58 }
 0x4a2   : > { %1189 = vmatprep.mubr.msk.f32.mxu0 %vm440_vm1, %v1594_v53 }
 0x4a5   : > { %1190 = vmatmul.mubr.msk.f32.gmra.mrb[6].mxu0 %vm440_vm1, %v1603_v54 }
 0x4a6   : > { %1192 = vmatprep.mubr.msk.f32.mxu0 %vm440_vm1, %v1608_v55 }
 0x4a9   : > { %1193 = vmatmul.mubr.msk.f32.gmra.mrb[8].mxu0 %vm440_vm1, %v1617_v56 }
 0x574   : > { %v1188_v38 = vpop.f32.mrb[4].mxu0  ;;  %v1197_v39 = vpop.f32.mrb[12].mxu1 }
 0x575   : > { %v827_v57 = vadd.f32 1e-06, %v1188_v38  ;;  %v857_v52 = vadd.f32 1e-06, %v1197_v39  ;;  %v821_v41 = vpop.f32.mrb[5].mxu0  ;;  %v851_v5 = vpop.f32.mrb[13].mxu1 }
 0x576   : > { %v822_v58 = vadd.f32 1e-06, %v821_v41  ;;  %v852_v6 = vadd.f32 1e-06, %v851_v5 }
 0x577   : > { %1294 = vrsqrt.f32 %v827_v57 }
 0x578   : > { %1296 = vrsqrt.f32 %v857_v52  ;;  %v1191_v53 = vpop.f32.mrb[6].mxu0 }
 0x579   : > { %1298 = vrsqrt.f32 %v822_v58  ;;  %v837_v54 = vadd.f32 1e-06, %v1191_v53  ;;  %v831_v42 = vpop.f32.mrb[7].mxu0 }
 0x57a   : > { %1300 = vrsqrt.f32 %v852_v6  ;;  %v832_v55 = vadd.f32 1e-06, %v831_v42 }
 0x57b   : > { %1302 = vrsqrt.f32 %v837_v54 }
 0x57c   : > { %1304 = vrsqrt.f32 %v832_v55  ;;  %v1194_v56 = vpop.f32.mrb[8].mxu0 }
 0x57d   : > { %v847_v43 = vadd.f32 1e-06, %v1194_v56  ;;  %v841_v44 = vpop.f32.mrb[9].mxu0 }
 0x57e   : > { %v842_v45 = vadd.f32 1e-06, %v841_v44 }
 0x57f   : > { %1306 = vrsqrt.f32 %v847_v43 }
 0x580   : > { %1308 = vrsqrt.f32 %v842_v45 }
 0x581   : > { %v1295_v47 = vpop.eup %1294 }
 0x582   : > { %v1297_v48 = vpop.eup %1296  ;;  %v877_v49 = vmul.f32 %v1295_v47, %v869_v46 }
 0x583   : > { %v1299_v12 = vpop.eup %1298  ;;  %v883_v13 = vmul.f32 %v1297_v48, %v875_v0 }
 0x584   : > { %v1301_v16 = vpop.eup %1300  ;;  %886 = vst.msk [vmem:[%s1711_s9 + $0x8] sm:$0xff] %vm884_vm2, %v877_v49  ;;  %v902_v17 = vmul.f32 %v1637_v59, %v877_v49  ;;  %v876_v22 = vmul.f32 %v1299_v12, %v868_v1 }
 0x585   : > { %v1303_v23 = vpop.eup %1302  ;;  %892 = vst.msk [vmem:[%s1711_s9 + $0x38] sm:$0xff] %vm884_vm2, %v883_v13  ;;  %v908_v59 = vmul.f32 %v1653_v7, %v883_v13  ;;  %v882_v25 = vmul.f32 %v1301_v16, %v874_v50 }
 0x586   : > { %v1305_v26 = vpop.eup %1304  ;;  %v910_v20 = vsub.f32 %v894_v51, %v902_v17  ;;  %885 = vst.msk [vmem:[%s1711_s9] sm:$0xff] %vm884_vm2, %v876_v22  ;;  %v901_v21 = vmul.f32 %v876_v22, %v1640_v60  ;;  %v879_v28 = vmul.f32 %v1303_v23, %v871_v11  ;;  %v873_v60 = vld [vmem:[%s1814_s1 + $0x28] sm:$0xff] }
 0x587   : > { %v916_v7 = vsub.f32 %v900_v14, %v908_v59  ;;  %891 = vst.msk [vmem:[%s1711_s9 + $0x30] sm:$0xff] %vm884_vm2, %v882_v25  ;;  %v907_v29 = vmul.f32 %v882_v25, %v1656_v10  ;;  %v878_v30 = vmul.f32 %v1305_v26, %v870_v15  ;;  %v895_v10 = vld [vmem:[%s1815_s2 + $0x10] sm:$0xff] }
 0x588   : > { %918 = vst.msk [vmem:[%s1737_s27 + $0x8] sm:$0xff] %vm884_vm2, %v910_v20  ;;  %v909_v19 = vsub.f32 %v893_v24, %v901_v21  ;;  %888 = vst.msk [vmem:[%s1711_s9 + $0x18] sm:$0xff] %vm884_vm2, %v879_v28  ;;  %v904_v31 = vmul.f32 %v1643_v61, %v879_v28 }
 0x589   : > { %v1307_v33 = vpop.eup %1306  ;;  %924 = vst.msk [vmem:[%s1737_s27 + $0x38] sm:$0xff] %vm884_vm2, %v916_v7  ;;  %v915_v34 = vsub.f32 %v899_v27, %v907_v29  ;;  %887 = vst.msk [vmem:[%s1711_s9 + $0x10] sm:$0xff] %vm884_vm2, %v878_v30  ;;  %v903_v61 = vmul.f32 %v878_v30, %v1646_v62 }
 0x58a   : > { %v1309_v8 = vpop.eup %1308  ;;  %917 = vst.msk [vmem:[%s1737_s27] sm:$0xff] %vm884_vm2, %v909_v19  ;;  %v912_v9 = vsub.f32 %v896_v18, %v904_v31  ;;  %v881_v2 = vmul.f32 %v1307_v33, %v873_v60 }
 0x58b   : > { %923 = vst.msk [vmem:[%s1737_s27 + $0x30] sm:$0xff] %vm884_vm2, %v915_v34  ;;  %v911_v4 = vsub.f32 %v895_v10, %v903_v61  ;;  %v880_v36 = vmul.f32 %v1309_v8, %v872_v32 }
 0x58c   : > { %920 = vst.msk [vmem:[%s1737_s27 + $0x18] sm:$0xff] %vm884_vm2, %v912_v9  ;;  %890 = vst.msk [vmem:[%s1711_s9 + $0x28] sm:$0xff] %vm884_vm2, %v881_v2  ;;  %v906_v62 = vmul.f32 %v1648_v63, %v881_v2 }
 0x58d   : > { %919 = vst.msk [vmem:[%s1737_s27 + $0x10] sm:$0xff] %vm884_vm2, %v911_v4  ;;  %889 = vst.msk [vmem:[%s1711_s9 + $0x20] sm:$0xff] %vm884_vm2, %v880_v36  ;;  %v905_v37 = vmul.f32 %v880_v36, %v1651_v3 }
 0x58e   : > { %v914_v38 = vsub.f32 %v898_v35, %v906_v62 }
 0x58f   : > { %v913_v39 = vsub.f32 %v897_v40, %v905_v37 }
 0x590   : > { %922 = vst.msk [vmem:[%s1737_s27 + $0x28] sm:$0xff] %vm884_vm2, %v914_v38 }
 0x591   : > { %921 = vst.msk [vmem:[%s1737_s27 + $0x20] sm:$0xff] %vm884_vm2, %v913_v39 }
 0x592 PF: > { %p17_p8 = scmp.ge.s32.totalorder %s1437_s26, 4   ;;  %s1823_s21 = smov %s1366_s22 }
 0x593   : > { %s1824_s22 = smov %s1370_s23  ;;  %s1825_s23 = smov %s1447_s29 }
 0x594   : > { %s1826_s24 = smov %s1437_s26  ;;  %19 = sbr.rel (!%p17_p8) target bundleno = 3 (0x3), region = 92 }
 0x59b   :  { %962 = vsyncpa [#allocation3], 1 }
 0x59c   :  { %964 = vsyncpa [#allocation3 + $0x1], 1 }

</bundles_post_ra>
